<compile_context>
chip_gen: v5e
topology: v5e:2x2
jax: 0.10.0
libtpu: 0.0.40
codegen_flags: <defaults>
</compile_context>

<pallas_src>
import jax
import jax.numpy as jnp
from jax.experimental import pallas as pl
from jax.experimental.pallas import tpu as pltpu


def _round_up(x, m):
    return (x + m - 1) // m * m


def _divisor_tile(dim_p, target):
    """Largest multiple of 128 that divides dim_p (a multiple of 128) and is <= target."""
    t = min(target, dim_p)
    t -= t % 128
    while t >= 128:
        if dim_p % t == 0:
            return t
        t -= 128
    return 128


def _vmem_capacity_bytes():
    try:
        info = pltpu.get_tpu_info()
        cap = getattr(info, "vmem_capacity_bytes", None)
        if cap:
            return int(cap)
    except Exception:
        pass
    # Conservative fallback: v7x per-TensorCore VMEM.
    return 64 * 1024 * 1024


def prepare_conv1d_params(weight, bias, compute_dtype=jnp.bfloat16):
    """Optional one-time parameter prep (cast W to the MXU-native dtype once,
    at load time) so no per-call cast pass over the full weight is needed."""
    return weight.astype(compute_dtype), bias.astype(jnp.float32)


# ------------------------------- kernels ----------------------------------


def _conv1d_kernel_acc_in_out(x_ref, w_ref, b_ref, o_ref):
    """f32 output: accumulate directly into the VMEM-resident output block."""
    k = pl.program_id(2)
    partial = jnp.dot(x_ref[...], w_ref[...], preferred_element_type=jnp.float32)

    @pl.when(k == 0)
    def _init():
        o_ref[...] = partial

    @pl.when(k > 0)
    def _accum():
        o_ref[...] += partial

    @pl.when(k == pl.num_programs(2) - 1)
    def _finalize():
        o_ref[...] += b_ref[...]


def _conv1d_kernel_scratch(x_ref, w_ref, b_ref, o_ref, acc_ref):
    """Generic output dtype: f32 scratch accumulator, single cast at k==last."""
    k = pl.program_id(2)

    @pl.when(k == 0)
    def _init():
        acc_ref[...] = jnp.zeros_like(acc_ref)

    acc_ref[...] += jnp.dot(x_ref[...], w_ref[...],
                            preferred_element_type=jnp.float32)

    @pl.when(k == pl.num_programs(2) - 1)
    def _finalize():
        o_ref[...] = (acc_ref[...] + b_ref[...]).astype(o_ref.dtype)


# ------------------------------- wrapper -----------------------------------


def conv1d(x, weight, bias, *, tm=512, tn=1024, tk=1024,
           compute_dtype=None, out_dtype=None):
    """y = x @ weight + bias over the last axis of x.

    x: (..., nx); weight: (nx, nf); bias: (nf,); returns (..., nf).

    tm/tn/tk are *target* tile sizes; actual tiles are fit to the problem and
    to the chip's VMEM. For best performance pass weight already in bf16
    (see prepare_conv1d_params) and set compute_dtype=jnp.bfloat16;
    accumulation is always f32.
    """
    nx, nf = weight.shape
    assert x.shape[-1] == nx, "last dim of x must equal nx"
    size_out = x.shape[:-1] + (nf,)
    out_dtype = out_dtype or x.dtype

    if compute_dtype is not None:
        if x.dtype != compute_dtype:
            x = x.astype(compute_dtype)
        if weight.dtype != compute_dtype:
            # NOTE: per-call cast of the full weight is an extra HBM pass;
            # prefer prepare_conv1d_params() once at parameter-load time.
            weight = weight.astype(compute_dtype)

    x2d = x.reshape(-1, nx)
    M = x2d.shape[0]

    in_it = jnp.dtype(x2d.dtype).itemsize
    out_it = jnp.dtype(out_dtype).itemsize
    acc_in_out = jnp.dtype(out_dtype) == jnp.dtype(jnp.float32)
    row_align = 8 if in_it >= 4 else (16 if in_it == 2 else 32)

    # Minimal K/N padding (to 128), then tiles that *divide* the padded dims.
    Kp = _round_up(nx, 128)
    Np = _round_up(nf, 128)

    vmem_cap = _vmem_capacity_bytes()
    vmem_budget = int(0.75 * vmem_cap)

    small_m = M <= min(512, tm)
    if small_m:
        # Decode / small-batch fast path: x DMA'd once, only W streams.
        tm_sel = _round_up(M, row_align)
        tk_sel = Kp
    else:
        n_m = pl.cdiv(M, tm)
        tm_sel = _round_up(pl.cdiv(M, n_m), row_align)
        tk_sel = Kp if Kp <= 2 * tk else _divisor_tile(Kp, tk)
    tn_sel = _divisor_tile(Np, tn)

    def _footprint(tm_, tn_, tk_):
        acc = 0 if acc_in_out else tm_ * tn_ * 4
        return 2 * (tm_ * tk_ * in_it + tk_ * tn_ * in_it
                    + tn_ * 4 + tm_ * tn_ * out_it) + acc

    # Shrink tiles (keeping divisor constraints) until they fit the budget.
    while _footprint(tm_sel, tn_sel, tk_sel) > vmem_budget:
        if tk_sel > 128:
            tk_sel = _divisor_tile(Kp, max(tk_sel // 2, 128))
        elif tn_sel > 128:
            tn_sel = _divisor_tile(Np, max(tn_sel // 2, 128))
        elif tm_sel > row_align:
            tm_sel = max(_round_up(tm_sel // 2, row_align), row_align)
        else:
            break

    Mp = _round_up(M, tm_sel)

    # v7x has 2 TensorCores sharded over the parallel grid axes: make sure the
    # parallel extent is >= 2 when possible.
    if (Mp // tm_sel) * (Np // tn_sel) == 1 and Np >= 256:
        tn_sel = _divisor_tile(Np, Np // 2)

    # Zero-pad (K zero-padding contributes nothing to the dot).
    if (Mp, Kp) != (M, nx):
        x2d = jnp.pad(x2d, ((0, Mp - M), (0, Kp - nx)))
    w_p = weight
    if (Kp, Np) != (nx, nf):
        w_p = jnp.pad(weight, ((0, Kp - nx), (0, Np - nf)))
    b_p = bias.astype(jnp.float32).reshape(1, nf)
    if Np != nf:
        b_p = jnp.pad(b_p, ((0, 0), (0, Np - nf)))

    grid = (Mp // tm_sel, Np // tn_sel, Kp // tk_sel)
    n_m_tiles, n_n_tiles = grid[0], grid[1]

    fp = _footprint(tm_sel, tn_sel, tk_sel)
    vmem_limit = int(min(max(2 * fp, 16 * 1024 * 1024), int(0.8 * vmem_cap)))

    # Actual traffic: W re-streamed per M tile, x re-streamed per N tile.
    cost = pl.CostEstimate(
        flops=2 * Mp * Kp * Np,
        transcendentals=0,
        bytes_accessed=int(Mp * Kp * in_it * n_n_tiles
                           + Kp * Np * in_it * n_m_tiles
                           + Np * 4 * n_m_tiles
                           + Mp * Np * out_it),
    )

    kernel = _conv1d_kernel_acc_in_out if acc_in_out else _conv1d_kernel_scratch
    scratch = [] if acc_in_out else [pltpu.VMEM((tm_sel, tn_sel), jnp.float32)]

    out2d = pl.pallas_call(
        kernel,
        out_shape=jax.ShapeDtypeStruct((Mp, Np), out_dtype),
        grid_spec=pltpu.PrefetchScalarGridSpec(
            num_scalar_prefetch=0,
            grid=grid,
            in_specs=[
                pl.BlockSpec((tm_sel, tk_sel), lambda i, j, k: (i, k)),
                pl.BlockSpec((tk_sel, tn_sel), lambda i, j, k: (k, j)),
                pl.BlockSpec((1, tn_sel), lambda i, j, k: (0, j)),
            ],
            out_specs=pl.BlockSpec((tm_sel, tn_sel), lambda i, j, k: (i, j)),
            scratch_shapes=scratch,
        ),
        compiler_params=pltpu.CompilerParams(
            dimension_semantics=("parallel", "parallel", "arbitrary"),
            vmem_limit_bytes=vmem_limit,
        ),
        cost_estimate=cost,
    )(x2d, w_p, b_p)

    if (Mp, Np) != (M, nf):
        out2d = out2d[:M, :nf]
    return out2d.reshape(size_out)


if __name__ == "__main__":
    key = jax.random.PRNGKey(0)
    k_w, k_x, k_w2, k_x2, k_b2, k_w3, k_x3, k_w4, k_x4 = jax.random.split(key, 9)

    # --- test 1: small GPT-2-like shapes (f32, fast path, single tile) ------
    batch, seq, nx, nf = 2, 8, 32, 64
    weight = (0.02 * jax.random.normal(k_w, (nx, nf))).astype(jnp.float32)
    bias = jnp.zeros((nf,), dtype=jnp.float32)
    x = jax.random.normal(k_x, (batch, seq, nx), dtype=jnp.float32)

    y = conv1d(x, weight, bias)
    jax.block_until_ready(y)
    y_ref = (x.reshape(-1, nx) @ weight + bias).reshape(batch, seq, nf)
    assert y.shape == (batch, seq, nf)
    assert jnp.allclose(y, y_ref, atol=1e-5, rtol=1e-5)

    # --- test 2: ragged shapes exercising padding + nonzero bias ------------
    b2, s2, nx2, nf2 = 3, 5, 48, 96
    weight2 = (0.02 * jax.random.normal(k_w2, (nx2, nf2))).astype(jnp.float32)
    bias2 = jax.random.normal(k_b2, (nf2,), dtype=jnp.float32)
    x2 = jax.random.normal(k_x2, (b2, s2, nx2), dtype=jnp.float32)

    y2 = conv1d(x2, weight2, bias2)
    jax.block_until_ready(y2)
    y2_ref = (x2.reshape(-1, nx2) @ weight2 + bias2).reshape(b2, s2, nf2)
    assert y2.shape == (b2, s2, nf2)
    assert jnp.allclose(y2, y2_ref, atol=1e-5, rtol=1e-5)

    # --- test 3: multi-tile M/N/K grid (accumulate-into-output path) --------
    b3, s3, nx3, nf3 = 2, 256, 384, 384      # M=512, 3 K-steps, 4x3 MN tiles
    weight3 = (0.02 * jax.random.normal(k_w3, (nx3, nf3))).astype(jnp.float32)
    bias3 = jnp.zeros((nf3,), dtype=jnp.float32)
    x3 = jax.random.normal(k_x3, (b3, s3, nx3), dtype=jnp.float32)

    y3 = conv1d(x3, weight3, bias3, tm=128, tn=128, tk=128)
    jax.block_until_ready(y3)
    y3_ref = (x3.reshape(-1, nx3) @ weight3 + bias3).reshape(b3, s3, nf3)
    assert jnp.allclose(y3, y3_ref, atol=1e-4, rtol=1e-4)

    # --- test 4: bf16 compute/output path (pre-cast weight, scratch acc) ----
    b4, s4, nx4, nf4 = 2, 64, 256, 256
    weight4_f32 = (0.02 * jax.random.normal(k_w4, (nx4, nf4))).astype(jnp.float32)
    bias4 = jnp.zeros((nf4,), dtype=jnp.float32)
    weight4, bias4p = prepare_conv1d_params(weight4_f32, bias4, jnp.bfloat16)
    x4 = jax.random.normal(k_x4, (b4, s4, nx4), dtype=jnp.float32).astype(jnp.bfloat16)

    y4 = conv1d(x4, weight4, bias4p, compute_dtype=jnp.bfloat16)
    jax.block_until_ready(y4)
    y4_ref = (x4.astype(jnp.float32).reshape(-1, nx4)
              @ weight4.astype(jnp.float32) + bias4).reshape(b4, s4, nf4)
    assert y4.dtype == jnp.bfloat16
    assert jnp.allclose(y4.astype(jnp.float32), y4_ref, atol=2e-2, rtol=2e-2)

    print("KERNEL_OK")
</pallas_src>

<mosaic_0001>
module attributes {stable_mosaic.version = 11 : i64} {
  func.func @_conv1d_kernel_acc_in_out(%arg0: i32, %arg1: i32, %arg2: i32, %arg3: memref<16x128xf32, #tpu.memory_space<vmem>>, %arg4: memref<128x128xf32, #tpu.memory_space<vmem>>, %arg5: memref<1x128xf32, #tpu.memory_space<vmem>>, %arg6: memref<16x128xf32, #tpu.memory_space<vmem>>) attributes {dimension_semantics = [#tpu.dimension_semantics<parallel>, #tpu.dimension_semantics<parallel>, #tpu.dimension_semantics<arbitrary>], iteration_bounds = array<i64: 1, 1, 1>, scalar_prefetch = 0 : i64, scratch_operands = 0 : i64, tpu.core_type = #tpu.core_type<tc>, window_params = [{transform_indices = @transform_0, window_bounds = array<i64: 16, 128>}, {transform_indices = @transform_1, window_bounds = array<i64: 128, 128>}, {transform_indices = @transform_2, window_bounds = array<i64: 1, 128>}, {transform_indices = @transform_3, window_bounds = array<i64: 16, 128>}]} {
    %c0 = arith.constant 0 : index
    %c0_0 = arith.constant 0 : index
    %0 = vector.load %arg3[%c0, %c0_0] : memref<16x128xf32, #tpu.memory_space<vmem>>, vector<16x128xf32>
    %c0_1 = arith.constant 0 : index
    %c0_2 = arith.constant 0 : index
    %1 = vector.load %arg4[%c0_1, %c0_2] : memref<128x128xf32, #tpu.memory_space<vmem>>, vector<128x128xf32>
    %cst = arith.constant dense<0.000000e+00> : vector<16x128xf32>
    %2 = tpu.matmul %0, %1, %cst {dimension_numbers = #tpu.dot_dimension_numbers<[1], [0], [0], [1], [0, 0, 1, 1], [], []>} : vector<16x128xf32>, vector<128x128xf32>, vector<16x128xf32> -> vector<16x128xf32>
    %c0_i32 = arith.constant 0 : i32
    %3 = arith.cmpi eq, %arg2, %c0_i32 : i32
    %4 = arith.extui %3 : i1 to i32
    %c0_i32_3 = arith.constant 0 : i32
    %5 = arith.cmpi ne, %4, %c0_i32_3 : i32
    scf.if %5 {
      %c0_8 = arith.constant 0 : index
      %c0_9 = arith.constant 0 : index
      %12 = vector.load %arg6[%c0_8, %c0_9] : memref<16x128xf32, #tpu.memory_space<vmem>>, vector<16x128xf32>
      tpu.vector_store %arg6[%c0_8, %c0_9], %2 {strides = array<i32>} : memref<16x128xf32, #tpu.memory_space<vmem>>, vector<16x128xf32>,
    } else {
    }
    %c0_i32_4 = arith.constant 0 : i32
    %6 = arith.cmpi sgt, %arg2, %c0_i32_4 : i32
    %7 = arith.extui %6 : i1 to i32
    %c0_i32_5 = arith.constant 0 : i32
    %8 = arith.cmpi ne, %7, %c0_i32_5 : i32
    scf.if %8 {
      %c0_8 = arith.constant 0 : index
      %c0_9 = arith.constant 0 : index
      %12 = vector.load %arg6[%c0_8, %c0_9] : memref<16x128xf32, #tpu.memory_space<vmem>>, vector<16x128xf32>
      %13 = arith.addf %12, %2 : vector<16x128xf32>
      %c0_10 = arith.constant 0 : index
      %c0_11 = arith.constant 0 : index
      %14 = vector.load %arg6[%c0_10, %c0_11] : memref<16x128xf32, #tpu.memory_space<vmem>>, vector<16x128xf32>
      tpu.vector_store %arg6[%c0_10, %c0_11], %13 {strides = array<i32>} : memref<16x128xf32, #tpu.memory_space<vmem>>, vector<16x128xf32>,
    } else {
    }
    %c0_i32_6 = arith.constant 0 : i32
    %9 = arith.cmpi eq, %arg2, %c0_i32_6 : i32
    %10 = arith.extui %9 : i1 to i32
    %c0_i32_7 = arith.constant 0 : i32
    %11 = arith.cmpi ne, %10, %c0_i32_7 : i32
    scf.if %11 {
      %c0_8 = arith.constant 0 : index
      %c0_9 = arith.constant 0 : index
      %12 = vector.load %arg6[%c0_8, %c0_9] : memref<16x128xf32, #tpu.memory_space<vmem>>, vector<16x128xf32>
      %c0_10 = arith.constant 0 : index
      %c0_11 = arith.constant 0 : index
      %13 = vector.load %arg5[%c0_10, %c0_11] : memref<1x128xf32, #tpu.memory_space<vmem>>, vector<1x128xf32>
      %14 = vector.broadcast %13 : vector<1x128xf32> to vector<16x128xf32>
      %15 = arith.addf %12, %14 : vector<16x128xf32>
      %c0_12 = arith.constant 0 : index
      %c0_13 = arith.constant 0 : index
      %16 = vector.load %arg6[%c0_12, %c0_13] : memref<16x128xf32, #tpu.memory_space<vmem>>, vector<16x128xf32>
      tpu.vector_store %arg6[%c0_12, %c0_13], %15 {strides = array<i32>} : memref<16x128xf32, #tpu.memory_space<vmem>>, vector<16x128xf32>,
    } else {
    }
    return
  }
  func.func @transform_0(%arg0: i32, %arg1: i32, %arg2: i32) -> (i32, i32) {
    %c0_i32 = arith.constant 0 : i32
    return %arg0, %arg2 : i32, i32
  }
  func.func @transform_1(%arg0: i32, %arg1: i32, %arg2: i32) -> (i32, i32) {
    %c0_i32 = arith.constant 0 : i32
    return %arg2, %arg1 : i32, i32
  }
  func.func @transform_2(%arg0: i32, %arg1: i32, %arg2: i32) -> (i32, i32) {
    %c0_i32 = arith.constant 0 : i32
    %c0_i32_0 = arith.constant 0 : i32
    return %c0_i32, %arg1 : i32, i32
  }
  func.func @transform_3(%arg0: i32, %arg1: i32, %arg2: i32) -> (i32, i32) {
    %c0_i32 = arith.constant 0 : i32
    return %arg0, %arg1 : i32, i32
  }
}

</mosaic_0001>

<bundles_post_ra>
// kernel: tpu_custom_call.1
= control target key start
LH: loop header
LB: loop body
LE: loop exit
PB: predicated region body
PF: predicated region fallthrough
CT: control target
= control target key end

     0   :  { %8 = vsyncpa [#allocation3], 0  ;;  %s283_s0 = inlined_call_operand.hbm [shape: f32[16,128], index: 0, kind: input, shape index: {}]   ;;  %s284_s1 = inlined_call_operand.hbm [shape: f32[128,128], index: 1, kind: input, shape index: {}]   ;;  %s285_s2 = inlined_call_operand.vmem [shape: f32[1,128], index: 2, kind: input, shape index: {}]   ;;  %s286_s3 = inlined_call_operand.hbm [shape: f32[16,128], index: 3, kind: output, shape index: {}]  }
   0x1   :  { %9 = vsyncpa [#allocation6], 0 }
   0x2   :  { %10 = vsyncpa [#allocation4], 0  ;;  %s15_s14 = sshll.u32 %s283_s0, 4  ;;  %s237_s15 = smov [#allocation2]   ;;  %s16_s14 = int_to_ptr.hbm [resolvable:$true] %s15_s14 }
   0x3   :  { %s17_s16 = sshll.u32 %s237_s15, 4  ;;  %s28_s19 = sshll.u32 %s284_s1, 4  ;;  %s18_s16 = int_to_ptr.vmem [resolvable:$true] %s17_s16  ;;  %s29_s19 = int_to_ptr.hbm [resolvable:$true] %s28_s19 }
   0x4   :  { %s238_s20 = smov 128   ;;  %s239_s21 = smov 8  }
   0x5   :  { %23 = dma.hbm_to_vmem [thread:$0]  %s16_s14, 256, %s18_s16, [#allocation3], %s238_s20, %s238_s20, %s239_s21  }
   0x6   :  { %s240_s22 = smov [#allocation5]  }
   0x7   :  { %s30_s23 = sshll.u32 %s240_s22, 4  ;;  %s31_s23 = int_to_ptr.vmem [resolvable:$true] %s30_s23 }
   0x8   :  { %36 = dma.hbm_to_vmem [thread:$0]  %s29_s19, 2048, %s31_s23, [#allocation6], %s238_s20, %s238_s20, %s239_s21  }
   0x9   :  { %231 = dma.done.wait [#allocation3], 256  }
   0xa   :  { %232 = vsyncadd [#allocation3], 4294967040 }
   0xb   :  { %233 = dma.done.wait [#allocation6], 2048  }
   0xc   :  { %234 = vsyncadd [#allocation6], 4294965248  ;;  %v64_v0 = vld [vmem:[#allocation5 + $0x78] sm:$0xff]  ;;  %v63_v1 = vld [vmem:[#allocation5 + $0x70] sm:$0xff]  ;;  %s241_s24 = smov [#allocation7]   ;;  %s123_s28 = sshll.u32 %s286_s3, 4  ;;  %s124_s28 = int_to_ptr.hbm [resolvable:$true] %s123_s28 }
   0xd   :  { %65 = vmatpush.msra.mxu0 %v64_v0  ;;  %137 = vmatpush.msra.mxu1 %v64_v0  ;;  %v62_v2 = vld [vmem:[#allocation5 + $0x68] sm:$0xff]  ;;  %v61_v3 = vld [vmem:[#allocation5 + $0x60] sm:$0xff]  ;;  %v60_v4 = vld [vmem:[#allocation5 + $0x58] sm:$0xff]  ;;  %s121_s25 = sshll.u32 %s241_s24, 4  ;;  %s122_s25 = int_to_ptr.vmem [resolvable:$true] %s121_s25 }
   0xe   :  { %v59_v5 = vld [vmem:[#allocation5 + $0x50] sm:$0xff]  ;;  %v58_v6 = vld [vmem:[#allocation5 + $0x48] sm:$0xff]  ;;  %v57_v7 = vld [vmem:[#allocation5 + $0x40] sm:$0xff] }
   0xf   :  { %66 = vmatpush.msra.mxu0 %v63_v1  ;;  %138 = vmatpush.msra.mxu1 %v63_v1  ;;  %v56_v8 = vld [vmem:[#allocation5 + $0x38] sm:$0xff]  ;;  %v55_v9 = vld [vmem:[#allocation5 + $0x30] sm:$0xff]  ;;  %v54_v10 = vld [vmem:[#allocation5 + $0x28] sm:$0xff] }
  0x10   :  { %v53_v11 = vld [vmem:[#allocation5 + $0x20] sm:$0xff]  ;;  %v52_v12 = vld [vmem:[#allocation5 + $0x18] sm:$0xff]  ;;  %v51_v13 = vld [vmem:[#allocation5 + $0x10] sm:$0xff] }
  0x11   :  { %67 = vmatpush.msra.mxu0 %v62_v2  ;;  %139 = vmatpush.msra.mxu1 %v62_v2  ;;  %v50_v14 = vld [vmem:[#allocation5 + $0x8] sm:$0xff]  ;;  %v49_v15 = vld [vmem:[#allocation5] sm:$0xff]  ;;  %v47_v16 = vld [vmem:[#allocation2] sm:$0xff] }
  0x12   :  { %v48_v17 = vld [vmem:[#allocation2 + $0x8] sm:$0xff]  ;;  %v158_v18 = vld [vmem:[%s285_s2] ss:$0 sm:$0xff] }
  0x13   :  { %68 = vmatpush.msra.mxu0 %v61_v3  ;;  %140 = vmatpush.msra.mxu1 %v61_v3 }
  0x15   :  { %69 = vmatpush.msra.mxu0 %v60_v4  ;;  %141 = vmatpush.msra.mxu1 %v60_v4 }
  0x17   :  { %70 = vmatpush.msra.mxu0 %v59_v5  ;;  %142 = vmatpush.msra.mxu1 %v59_v5 }
  0x19   :  { %71 = vmatpush.msra.mxu0 %v58_v6  ;;  %143 = vmatpush.msra.mxu1 %v58_v6 }
  0x1b   :  { %72 = vmatpush.msra.mxu0 %v57_v7  ;;  %144 = vmatpush.msra.mxu1 %v57_v7 }
  0x1d   :  { %73 = vmatpush.msra.mxu0 %v56_v8  ;;  %145 = vmatpush.msra.mxu1 %v56_v8 }
  0x1f   :  { %74 = vmatpush.msra.mxu0 %v55_v9  ;;  %146 = vmatpush.msra.mxu1 %v55_v9 }
  0x21   :  { %75 = vmatpush.msra.mxu0 %v54_v10  ;;  %147 = vmatpush.msra.mxu1 %v54_v10 }
  0x23   :  { %76 = vmatpush.msra.mxu0 %v53_v11  ;;  %148 = vmatpush.msra.mxu1 %v53_v11 }
  0x25   :  { %77 = vmatpush.msra.mxu0 %v52_v12  ;;  %149 = vmatpush.msra.mxu1 %v52_v12 }
  0x27   :  { %78 = vmatpush.msra.mxu0 %v51_v13  ;;  %150 = vmatpush.msra.mxu1 %v51_v13 }
  0x29   :  { %79 = vmatpush.msra.mxu0 %v50_v14  ;;  %151 = vmatpush.msra.mxu1 %v50_v14 }
  0x2b   :  { %80 = vmatpush.msra.mxu0 %v49_v15  ;;  %152 = vmatpush.msra.mxu1 %v49_v15 }
  0x2c   :  { %81 = vmatmul.f32.vlgmr.msra.gmra.mxu0 %v47_v16  ;;  %84 = vmatmul.f32.vlgmr.msra.gmra.mxu1 %v48_v17 }
  0xa9   :  { %v82_v19 = vpop.f32.mrf.mxu0  ;;  %v85_v20 = vpop.f32.mrf.mxu1 }
  0xaa   :  { %v113_v21 = vadd.f32 %v158_v18, %v82_v19  ;;  %v114_v22 = vadd.f32 %v158_v18, %v85_v20 }
  0xac   :  { %115 = vst [vmem:[#allocation7] sm:$0xff] %v113_v21 }
  0xad   :  { %116 = vst [vmem:[#allocation7 + $0x8] sm:$0xff] %v114_v22 }
  0xae   :  { %129 = dma.vmem_to_hbm [thread:$0]  %s122_s25, 256, %s124_s28, [#allocation4], %s238_s20, %s238_s20, %s239_s21  }
  0xaf   :  { %235 = dma.done.wait [#allocation4], 256  }
  0xb0   :  { %236 = vsyncadd [#allocation4], 4294967040 }
  0xb1   :  { %134 = vsyncpa [#allocation3], 1 }
  0xb2   :  { %135 = vsyncpa [#allocation6], 1 }
  0xb3   :  { %136 = vsyncpa [#allocation4], 1 }

</bundles_post_ra>
